<compile_context>
chip_gen: v6e
topology: v6e:2x2x1
jax: 0.10.0
libtpu: 0.0.40
codegen_flags: <defaults>
</compile_context>

<pallas_src>
import functools

import jax
import jax.numpy as jnp
from jax import lax
from jax.experimental import pallas as pl
from jax.experimental.pallas import tpu as pltpu


_N_VEC_STATS = 5     # |s-c|, s, c, s*s, c*c   (s*c recovered from the Gram)
_CHUNK_COLS = 128    # lane-aligned chunk processed per fori_loop step
_CHUNK_UNROLL = 8


# -----------------------------------------------------------------------------
# Per-generation defaults (best effort; safe fallbacks when no TPU is visible).
# -----------------------------------------------------------------------------
def _tpu_info():
    try:
        return pltpu.get_tpu_info()
    except Exception:
        return None


def _default_num_shards():
    """Column shards on the 'parallel' grid axis == TensorCores per chip."""
    info = _tpu_info()
    if info is None:
        return 1
    for attr in ("num_tensorcores", "tensorcore_count", "num_cores",
                 "core_count"):
        v = getattr(info, attr, None)
        if isinstance(v, int) and v > 0:
            return max(1, min(2, v))
    name = str(getattr(info, "chip_version", "")).lower()
    return 2 if "7" in name else 1          # v7x: 2 TCs; v5e/v6e: 1


def _default_block_bytes():
    """Per-input block byte budget derived from this generation's VMEM."""
    info = _tpu_info()
    vmem = getattr(info, "vmem_capacity_bytes", None) if info is not None else None
    if not isinstance(vmem, int) or vmem <= 0:
        vmem = 128 << 20                     # v5e / v6e physical VMEM
    # 2 inputs x 2 pipeline buffers -> ~vmem/4 of input buffers, leaving the
    # rest for resident output blocks, compiler scratch and headroom.
    # 128 MiB (v5e/v6e) -> 8 MiB blocks; 64 MiB (v7x) -> 4 MiB blocks.
    return int(max(1 << 20, min(8 << 20, vmem // 16)))


# -----------------------------------------------------------------------------
# Pallas kernel: streaming image statistics over lane-dense (N*C, H*W) images.
#
# Grid = (num_shards [parallel], col_tiles_per_shard [arbitrary]).
# Outputs (accumulated in their VMEM-resident blocks, summed in the epilogue):
#   vec[s, 0..4] : (N*C, 128) per-lane partial sums of |s-c|, s, c, s*s, c*c
#   gram[s]      : (N*C, N*C) Gram of the difference; its trace gives
#                  sum((s-c)^2) (MSE and the sum(s*c) recovery) and its
#                  per-sample diagonal blocks give the LPIPS-proxy term.
# -----------------------------------------------------------------------------
def _image_stats_kernel(s_ref, c_ref, vec_ref, gram_ref, *,
                        n_chunks, unroll, mm_dtype):
    t = pl.program_id(1)

    @pl.when(t == 0)
    def _init():
        vec_ref[...] = jnp.zeros_like(vec_ref)
        gram_ref[...] = jnp.zeros_like(gram_ref)

    def body(k, carry):
        start = pl.multiple_of(k * _CHUNK_COLS, _CHUNK_COLS)
        col = pl.ds(start, _CHUNK_COLS)

        # Load / upcast / subtract one lane-aligned chunk at a time: no
        # tile-sized f32 copies of s, c or d are ever materialised.
        sk = s_ref[:, col].astype(jnp.float32)
        ck = c_ref[:, col].astype(jnp.float32)
        dk = sk - ck

        # Gram of the difference: one NT matmul per chunk on the MXU, f32
        # accumulation in the VMEM-resident output block.  bf16 operands when
        # the inputs stream as bf16 (MXU-native); f32 otherwise.
        # TODO(synk): verify via pl.lower_as_mlir that this contraction lowers
        # without an explicit XLU transpose of the chunk.
        dmm = dk.astype(mm_dtype)
        gram_ref[0, :, :] = gram_ref[0, :, :] + lax.dot_general(
            dmm, dmm, (((1,), (1,)), ((), ())),
            preferred_element_type=jnp.float32)

        # Per-lane partial sums accumulated straight into the VMEM-resident
        # output block (vld + vadd + vst): no vreg-resident accumulators, so
        # no spills when N*C grows past ~10 rows.
        vec_ref[0, 0, :, :] = vec_ref[0, 0, :, :] + jnp.abs(dk)
        vec_ref[0, 1, :, :] = vec_ref[0, 1, :, :] + sk
        vec_ref[0, 2, :, :] = vec_ref[0, 2, :, :] + ck
        vec_ref[0, 3, :, :] = vec_ref[0, 3, :, :] + sk * sk
        vec_ref[0, 4, :, :] = vec_ref[0, 4, :, :] + ck * ck
        return carry

    lax.fori_loop(0, n_chunks, body, 0, unroll=unroll)


def image_stats(s2d, c2d, *, target_block_bytes=None, num_shards=None,
                tile_cols=None):
    """Streams two lane-dense (N*C, H*W) images once; returns partial stats.

    Returns (vec, gram):
      vec  : (num_shards, 5, N*C, 128) per-lane partial sums of
             |s-c|, s, c, s*s, c*c over the shard's columns
      gram : (num_shards, N*C, N*C)    partial Grams of the difference
    """
    assert s2d.shape == c2d.shape and s2d.ndim == 2
    assert s2d.dtype == c2d.dtype
    nc, hw = s2d.shape
    itemsize = jnp.dtype(s2d.dtype).itemsize

    if num_shards is None:
        num_shards = _default_num_shards()
    if target_block_bytes is None:
        target_block_bytes = _default_block_bytes()

    if tile_cols is None:
        # Largest lane-aligned tile within the per-generation byte budget, but
        # never wider than one tile per shard needs.
        budget_cols = max(_CHUNK_COLS,
                          (target_block_bytes // (itemsize * nc))
                          // _CHUNK_COLS * _CHUNK_COLS)
        shard_cols = pl.cdiv(hw, num_shards * _CHUNK_COLS) * _CHUNK_COLS
        tile_cols = min(budget_cols, shard_cols)
        # Prefer a tile width that divides the shard extent exactly (no pad
        # copy of the inputs), as long as it stays within 4x of the budget.
        if num_shards * shard_cols == hw and shard_cols % tile_cols != 0:
            for cand in range(tile_cols - _CHUNK_COLS, 0, -_CHUNK_COLS):
                if shard_cols % cand == 0:
                    if cand * 4 >= tile_cols:
                        tile_cols = cand
                    break
    assert tile_cols % _CHUNK_COLS == 0 and tile_cols > 0

    # Pad the spatial axis so it splits into num_shards shards of whole tiles;
    # zero columns are neutral for every accumulated statistic, so the padded
    # columns never bias the results (true element counts are used downstream).
    tiles_per_shard = pl.cdiv(hw, num_shards * tile_cols)
    hw_padded = num_shards * tiles_per_shard * tile_cols
    if hw_padded != hw:
        pad = hw_padded - hw
        s2d = jnp.pad(s2d, ((0, 0), (0, pad)))
        c2d = jnp.pad(c2d, ((0, 0), (0, pad)))

    mm_dtype = (jnp.bfloat16 if jnp.dtype(s2d.dtype) == jnp.dtype(jnp.bfloat16)
                else jnp.float32)
    n_chunks = tile_cols // _CHUNK_COLS
    unroll = max(1, min(_CHUNK_UNROLL, n_chunks))

    kernel = functools.partial(_image_stats_kernel, n_chunks=n_chunks,
                               unroll=unroll, mm_dtype=mm_dtype)

    in_spec = pl.BlockSpec((nc, tile_cols),
                           lambda s, t: (0, s * tiles_per_shard + t))

    # Scoped-VMEM budget: 2 inputs x 2 pipeline buffers + (double-buffered)
    # resident output blocks + headroom.
    in_block_bytes = nc * tile_cols * itemsize
    out_block_bytes = 4 * (_N_VEC_STATS * nc * 128 + nc * nc)
    vmem_limit = int(max(4 * in_block_bytes + 4 * out_block_bytes + (8 << 20),
                         32 << 20))

    return pl.pallas_call(
        kernel,
        grid=(num_shards, tiles_per_shard),
        in_specs=[in_spec, in_spec],
        out_specs=[
            pl.BlockSpec((1, _N_VEC_STATS, nc, 128), lambda s, t: (s, 0, 0, 0)),
            pl.BlockSpec((1, nc, nc), lambda s, t: (s, 0, 0)),
        ],
        out_shape=[
            jax.ShapeDtypeStruct((num_shards, _N_VEC_STATS, nc, 128),
                                 jnp.float32),
            jax.ShapeDtypeStruct((num_shards, nc, nc), jnp.float32),
        ],
        compiler_params=pltpu.CompilerParams(
            dimension_semantics=("parallel", "arbitrary"),
            vmem_limit_bytes=vmem_limit),
    )(s2d, c2d)


# -----------------------------------------------------------------------------
# Combined loss (mirrors CombinedSteganographyLoss.forward); fully jit-able.
# -----------------------------------------------------------------------------
LOSS_WEIGHTS = {              # config.loss_weights (deterministic, in-script)
    "message": 10.0,
    "image_quality": 1.0,
    "capacity": 0.1,
    "adversarial": 0.001,
}
TARGET_CAPACITY = 0.3         # CapacityLoss(target_capacity=0.3)
MSE_W, LPIPS_W, SSIM_W = 1.0, 1.0, 1.0   # ImageQualityLoss weights


def _bce_with_logits_mean(logits, labels):
    x = logits.astype(jnp.float32)
    y = labels.astype(jnp.float32)
    # numerically stable BCE with logits
    return jnp.mean(jnp.maximum(x, 0.0) - x * y + jnp.log1p(jnp.exp(-jnp.abs(x))))


def combined_steganography_loss(outputs, targets, perceptual_w):
    losses = {}

    if "decoded_messages" in outputs and "messages" in targets:
        # Tiny (B, L) reduction: plain jnp (fused by XLA) — a dedicated
        # pallas_call here is pure launch overhead.
        losses["message"] = _bce_with_logits_mean(outputs["decoded_messages"],
                                                  targets["messages"])

    if "stego_images" in outputs and "cover_images" in targets:
        stego = outputs["stego_images"]
        cover = targets["cover_images"]
        n, ch, h, w = stego.shape
        # Free reshape of NCHW -> lane-dense (N*C, H*W); no transpose copy.
        # If the model produces bf16 images they stream as bf16 (no cast pass).
        s_ld = stego.reshape(n * ch, h * w)
        c_ld = cover.reshape(n * ch, h * w)
        vec, gram = image_stats(s_ld, c_ld)

        sums = jnp.sum(vec, axis=(0, 2, 3))                  # (5,)
        sum_abs, sum_s, sum_c, sum_ss, sum_cc = (sums[0], sums[1], sums[2],
                                                 sums[3], sums[4])
        gram_full = jnp.sum(gram, axis=0)                    # (N*C, N*C)
        trace_d = jnp.trace(gram_full)                       # = sum((s-c)^2)
        # Per-sample diagonal blocks -> summed channel Gram of the difference.
        idx = jnp.arange(n)
        g = gram_full.reshape(n, ch, n, ch)[idx, :, idx, :].sum(axis=0)  # (C,C)

        n_el = jnp.float32(n * ch * h * w)
        mse = trace_d / n_el

        # LPIPS proxy via the Gram identity sum((D@W)^2) == <D^T D, W W^T>.
        # TODO(synk): a real LPIPS loss needs a pretrained feature network.
        w32 = perceptual_w.astype(jnp.float32)
        wwt = jnp.dot(w32, w32.T, precision=lax.Precision.HIGHEST)
        n_feat = jnp.float32(n * h * w * perceptual_w.shape[1])
        lpips_proxy = jnp.sum(g * wwt) / n_feat

        # Global-statistics SSIM (simplification of 11x11 windowed SSIM).
        # sum(s*c) is recovered from the Gram trace: tr(D D^T) = ss + cc - 2sc.
        sum_sc = 0.5 * (sum_ss + sum_cc - trace_d)
        mu_s = sum_s / n_el
        mu_c = sum_c / n_el
        var_s = sum_ss / n_el - mu_s * mu_s
        var_c = sum_cc / n_el - mu_c * mu_c
        cov = sum_sc / n_el - mu_s * mu_c
        c1, c2 = 0.01 ** 2, 0.03 ** 2
        ssim = ((2.0 * mu_s * mu_c + c1) * (2.0 * cov + c2)) / (
            (mu_s * mu_s + mu_c * mu_c + c1) * (var_s + var_c + c2))
        losses["image_quality"] = (MSE_W * mse + LPIPS_W * lpips_proxy
                                   + SSIM_W * (1.0 - ssim))

        losses["capacity"] = (sum_abs / n_el - TARGET_CAPACITY) ** 2

    if "discriminator_pred" in outputs:
        # Hinge generator loss: -mean(pred); tiny, plain jnp.
        losses["adversarial"] = -jnp.mean(
            outputs["discriminator_pred"].astype(jnp.float32))

    # TODO(synk): VAE / robustness losses are disabled in the reference config
    # (no config.use_vae / config.use_robustness) and are not implemented.

    total = jnp.float32(0.0)
    for name, loss in losses.items():
        total = total + LOSS_WEIGHTS.get(name, 1.0) * loss

    loss_dict = dict(losses)
    loss_dict["total"] = total     # jnp scalars; no host syncs inside the loss
    return total, loss_dict


# -----------------------------------------------------------------------------
# Pure-jnp reference (original transpose + explicit projection formulation);
# used only for the correctness check in __main__.
# -----------------------------------------------------------------------------
def _reference_loss(outputs, targets, perceptual_w):
    losses = {}
    x = outputs["decoded_messages"].astype(jnp.float32)
    y = targets["messages"].astype(jnp.float32)
    losses["message"] = jnp.mean(jnp.maximum(x, 0.0) - x * y
                                 + jnp.log1p(jnp.exp(-jnp.abs(x))))

    stego = outputs["stego_images"]
    cover = targets["cover_images"]
    n, ch, h, w = stego.shape
    sr = jnp.transpose(stego, (0, 2, 3, 1)).reshape(-1, ch).astype(jnp.float32)
    cr = jnp.transpose(cover, (0, 2, 3, 1)).reshape(-1, ch).astype(jnp.float32)
    d = sr - cr
    mse = jnp.mean(d * d)
    fd = jnp.dot(d, perceptual_w.astype(jnp.float32),
                 precision=lax.Precision.HIGHEST)
    lpips_proxy = jnp.mean(fd * fd)
    mu_s = jnp.mean(sr)
    mu_c = jnp.mean(cr)
    var_s = jnp.mean(sr * sr) - mu_s ** 2
    var_c = jnp.mean(cr * cr) - mu_c ** 2
    cov = jnp.mean(sr * cr) - mu_s * mu_c
    c1, c2 = 0.01 ** 2, 0.03 ** 2
    ssim = ((2.0 * mu_s * mu_c + c1) * (2.0 * cov + c2)) / (
        (mu_s ** 2 + mu_c ** 2 + c1) * (var_s + var_c + c2))
    losses["image_quality"] = mse + lpips_proxy + (1.0 - ssim)
    losses["capacity"] = (jnp.mean(jnp.abs(d)) - TARGET_CAPACITY) ** 2
    losses["adversarial"] = -jnp.mean(outputs["discriminator_pred"])

    total = jnp.float32(0.0)
    for name, loss in losses.items():
        total = total + LOSS_WEIGHTS[name] * loss
    losses["total"] = total
    return total, losses


if __name__ == "__main__":
    key = jax.random.PRNGKey(0)
    (k_cover, k_noise, k_dec, k_msg, k_disc, k_w,
     k_s2, k_n2) = jax.random.split(key, 8)

    B, C, H, W = 2, 4, 16, 16
    L = 8          # message length
    F = 8          # perceptual projection features

    cover = jax.random.uniform(k_cover, (B, C, H, W), jnp.float32)
    stego = jnp.clip(
        cover + 0.05 * jax.random.normal(k_noise, (B, C, H, W), jnp.float32),
        0.0, 1.0)
    decoded = jax.random.normal(k_dec, (B, L), jnp.float32)           # logits
    messages = jax.random.bernoulli(k_msg, 0.5, (B, L)).astype(jnp.float32)
    disc_pred = jax.random.normal(k_disc, (B, 1), jnp.float32)
    perceptual_w = 0.5 * jax.random.normal(k_w, (C, F), jnp.float32)

    outputs = {"decoded_messages": decoded,
               "stego_images": stego,
               "discriminator_pred": disc_pred}
    targets = {"messages": messages, "cover_images": cover}

    loss_fn = jax.jit(combined_steganography_loss)
    total, loss_dict = loss_fn(outputs, targets, perceptual_w)
    jax.block_until_ready(total)

    # ---- correctness checks (host side, not part of the jitted loss) -------
    ref_total, ref_dict = _reference_loss(outputs, targets, perceptual_w)
    for name in ("message", "image_quality", "capacity", "adversarial", "total"):
        got, want = loss_dict[name], ref_dict[name]
        if not jnp.allclose(got, want, rtol=2e-3, atol=2e-4):
            raise AssertionError(f"{name}: got {got}, reference {want}")

    # Exercise multi-tile ("arbitrary"), multi-shard ("parallel") and the
    # pad-to-whole-tiles path on a wider synthetic problem (1152 = 4.5 * 256).
    NC2, HW2 = 8, 1152
    s2 = jax.random.uniform(k_s2, (NC2, HW2), jnp.float32)
    c2 = jnp.clip(s2 + 0.05 * jax.random.normal(k_n2, (NC2, HW2), jnp.float32),
                  0.0, 1.0)
    d2 = s2 - c2
    sums_want = jnp.stack([jnp.sum(jnp.abs(d2)), jnp.sum(s2), jnp.sum(c2),
                           jnp.sum(s2 * s2), jnp.sum(c2 * c2)])
    gram_want = jnp.einsum("ap,bp->ab", d2, d2,
                           precision=lax.Precision.HIGHEST)
    for shards in (1, 2):
        vec, gram = image_stats(s2, c2, tile_cols=256, num_shards=shards)
        sums_got = jnp.sum(vec, axis=(0, 2, 3))
        gram_got = jnp.sum(gram, axis=0)
        if not jnp.allclose(sums_got, sums_want, rtol=5e-3, atol=5e-3):
            raise AssertionError(f"vector stats mismatch (num_shards={shards})")
        if not jnp.allclose(gram_got, gram_want, rtol=5e-3, atol=5e-3):
            raise AssertionError(f"gram mismatch (num_shards={shards})")

    # bf16 streaming path (model already produces bf16): kernel upcasts per
    # chunk and feeds the Gram matmul bf16 operands with f32 accumulation.
    s_bf = stego.reshape(B * C, H * W).astype(jnp.bfloat16)
    c_bf = cover.reshape(B * C, H * W).astype(jnp.bfloat16)
    vec_bf, gram_bf = image_stats(s_bf, c_bf)
    s_bf32 = s_bf.astype(jnp.float32)
    c_bf32 = c_bf.astype(jnp.float32)
    d_bf32 = s_bf32 - c_bf32
    sums_bf_want = jnp.stack([jnp.sum(jnp.abs(d_bf32)), jnp.sum(s_bf32),
                              jnp.sum(c_bf32), jnp.sum(s_bf32 * s_bf32),
                              jnp.sum(c_bf32 * c_bf32)])
    gram_bf_want = jnp.dot(d_bf32.astype(jnp.bfloat16),
                           d_bf32.astype(jnp.bfloat16).T,
                           preferred_element_type=jnp.float32)
    if not jnp.allclose(jnp.sum(vec_bf, axis=(0, 2, 3)), sums_bf_want,
                        rtol=2e-3, atol=2e-3):
        raise AssertionError("bf16 vector stats mismatch")
    if not jnp.allclose(jnp.sum(gram_bf, axis=0), gram_bf_want,
                        rtol=2e-2, atol=2e-3):
        raise AssertionError("bf16 gram mismatch")
    bf_total, _ = loss_fn(
        {**outputs, "stego_images": stego.astype(jnp.bfloat16)},
        {**targets, "cover_images": cover.astype(jnp.bfloat16)},
        perceptual_w)
    jax.block_until_ready(bf_total)
    if not bool(jnp.isfinite(bf_total)):
        raise AssertionError("bf16 loss is not finite")

    print("KERNEL_OK")
</pallas_src>

<mosaic_0001>
module attributes {stable_mosaic.version = 11 : i64} {
  func.func @_image_stats_kernel(%arg0: i32, %arg1: i32, %arg2: memref<8x256xf32, #tpu.memory_space<vmem>>, %arg3: memref<8x256xf32, #tpu.memory_space<vmem>>, %arg4: memref<1x5x8x128xf32, #tpu.memory_space<vmem>>, %arg5: memref<1x8x8xf32, #tpu.memory_space<vmem>>) attributes {dimension_semantics = [#tpu.dimension_semantics<parallel>, #tpu.dimension_semantics<arbitrary>], iteration_bounds = array<i64: 1, 1>, scalar_prefetch = 0 : i64, scratch_operands = 0 : i64, tpu.core_type = #tpu.core_type<tc>, window_params = [{transform_indices = @transform_0, window_bounds = array<i64: 8, 256>}, {transform_indices = @transform_1, window_bounds = array<i64: 8, 256>}, {transform_indices = @transform_2, window_bounds = array<i64: 1, 5, 8, 128>}, {transform_indices = @transform_3, window_bounds = array<i64: 1, 8, 8>}]} {
    %c0_i32 = arith.constant 0 : i32
    %0 = arith.cmpi eq, %arg1, %c0_i32 : i32
    %1 = arith.extui %0 : i1 to i32
    %c0_i32_0 = arith.constant 0 : i32
    %2 = arith.cmpi ne, %1, %c0_i32_0 : i32
    scf.if %2 {
      %cst_95 = arith.constant 0.000000e+00 : f32
      %97 = vector.broadcast %cst_95 : f32 to vector<1x5x8x128xf32>
      %c0_96 = arith.constant 0 : index
      %c0_97 = arith.constant 0 : index
      %c0_98 = arith.constant 0 : index
      %c0_99 = arith.constant 0 : index
      %98 = vector.load %arg4[%c0_96, %c0_97, %c0_98, %c0_99] : memref<1x5x8x128xf32, #tpu.memory_space<vmem>>, vector<1x5x8x128xf32>
      tpu.vector_store %arg4[%c0_96, %c0_97, %c0_98, %c0_99], %97 {strides = array<i32>} : memref<1x5x8x128xf32, #tpu.memory_space<vmem>>, vector<1x5x8x128xf32>,
      %cst_100 = arith.constant 0.000000e+00 : f32
      %99 = vector.broadcast %cst_100 : f32 to vector<1x8x8xf32>
      %c0_101 = arith.constant 0 : index
      %c0_102 = arith.constant 0 : index
      %c0_103 = arith.constant 0 : index
      %100 = vector.load %arg5[%c0_101, %c0_102, %c0_103] : memref<1x8x8xf32, #tpu.memory_space<vmem>>, vector<1x8x8xf32>
      tpu.vector_store %arg5[%c0_101, %c0_102, %c0_103], %99 {strides = array<i32>} : memref<1x8x8xf32, #tpu.memory_space<vmem>>, vector<1x8x8xf32>,
    } else {
    }
    %c0_i32_1 = arith.constant 0 : i32
    %c128_i32 = arith.constant 128 : i32
    %3 = arith.muli %c0_i32_1, %c128_i32 : i32
    %4 = tpu.assume_multiple %3, 128 : i32
    %c0 = arith.constant 0 : index
    %5 = arith.index_cast %4 : i32 to index
    %6 = vector.load %arg2[%c0, %5] : memref<8x256xf32, #tpu.memory_space<vmem>>, vector<8x128xf32>
    %c0_2 = arith.constant 0 : index
    %7 = arith.index_cast %4 : i32 to index
    %8 = vector.load %arg3[%c0_2, %7] : memref<8x256xf32, #tpu.memory_space<vmem>>, vector<8x128xf32>
    %9 = arith.subf %6, %8 : vector<8x128xf32>
    %c0_3 = arith.constant 0 : index
    %c0_4 = arith.constant 0 : index
    %c0_5 = arith.constant 0 : index
    %10 = vector.load %arg5[%c0_3, %c0_4, %c0_5] : memref<1x8x8xf32, #tpu.memory_space<vmem>>, vector<1x8x8xf32>
    %11 = vector.shape_cast %10 : vector<1x8x8xf32> to vector<8x8xf32>
    %cst = arith.constant dense<0.000000e+00> : vector<8x8xf32>
    %12 = tpu.matmul %9, %9, %cst {dimension_numbers = #tpu.dot_dimension_numbers<[1], [1], [0], [0], [0, 0, 1, 0], [], []>} : vector<8x128xf32>, vector<8x128xf32>, vector<8x8xf32> -> vector<8x8xf32>
    %13 = arith.addf %11, %12 : vector<8x8xf32>
    %c0_6 = arith.constant 0 : index
    %c0_7 = arith.constant 0 : index
    %c0_8 = arith.constant 0 : index
    %14 = vector.load %arg5[%c0_6, %c0_7, %c0_8] : memref<1x8x8xf32, #tpu.memory_space<vmem>>, vector<1x8x8xf32>
    %15 = vector.shape_cast %14 : vector<1x8x8xf32> to vector<8x8xf32>
    %16 = vector.shape_cast %13 : vector<8x8xf32> to vector<1x8x8xf32>
    tpu.vector_store %arg5[%c0_6, %c0_7, %c0_8], %16 {strides = array<i32>} : memref<1x8x8xf32, #tpu.memory_space<vmem>>, vector<1x8x8xf32>,
    %c0_9 = arith.constant 0 : index
    %c0_10 = arith.constant 0 : index
    %c0_11 = arith.constant 0 : index
    %c0_12 = arith.constant 0 : index
    %17 = vector.load %arg4[%c0_9, %c0_10, %c0_11, %c0_12] : memref<1x5x8x128xf32, #tpu.memory_space<vmem>>, vector<1x1x8x128xf32>
    %18 = vector.shape_cast %17 : vector<1x1x8x128xf32> to vector<8x128xf32>
    %19 = math.absf %9 : vector<8x128xf32>
    %20 = arith.addf %18, %19 : vector<8x128xf32>
    %c0_13 = arith.constant 0 : index
    %c0_14 = arith.constant 0 : index
    %c0_15 = arith.constant 0 : index
    %c0_16 = arith.constant 0 : index
    %21 = vector.load %arg4[%c0_13, %c0_14, %c0_15, %c0_16] : memref<1x5x8x128xf32, #tpu.memory_space<vmem>>, vector<1x1x8x128xf32>
    %22 = vector.shape_cast %21 : vector<1x1x8x128xf32> to vector<8x128xf32>
    %23 = vector.shape_cast %20 : vector<8x128xf32> to vector<1x1x8x128xf32>
    tpu.vector_store %arg4[%c0_13, %c0_14, %c0_15, %c0_16], %23 {strides = array<i32>} : memref<1x5x8x128xf32, #tpu.memory_space<vmem>>, vector<1x1x8x128xf32>,
    %c0_17 = arith.constant 0 : index
    %c1 = arith.constant 1 : index
    %c0_18 = arith.constant 0 : index
    %c0_19 = arith.constant 0 : index
    %24 = vector.load %arg4[%c0_17, %c1, %c0_18, %c0_19] : memref<1x5x8x128xf32, #tpu.memory_space<vmem>>, vector<1x1x8x128xf32>
    %25 = vector.shape_cast %24 : vector<1x1x8x128xf32> to vector<8x128xf32>
    %26 = arith.addf %25, %6 : vector<8x128xf32>
    %c0_20 = arith.constant 0 : index
    %c1_21 = arith.constant 1 : index
    %c0_22 = arith.constant 0 : index
    %c0_23 = arith.constant 0 : index
    %27 = vector.load %arg4[%c0_20, %c1_21, %c0_22, %c0_23] : memref<1x5x8x128xf32, #tpu.memory_space<vmem>>, vector<1x1x8x128xf32>
    %28 = vector.shape_cast %27 : vector<1x1x8x128xf32> to vector<8x128xf32>
    %29 = vector.shape_cast %26 : vector<8x128xf32> to vector<1x1x8x128xf32>
    tpu.vector_store %arg4[%c0_20, %c1_21, %c0_22, %c0_23], %29 {strides = array<i32>} : memref<1x5x8x128xf32, #tpu.memory_space<vmem>>, vector<1x1x8x128xf32>,
    %c0_24 = arith.constant 0 : index
    %c2 = arith.constant 2 : index
    %c0_25 = arith.constant 0 : index
    %c0_26 = arith.constant 0 : index
    %30 = vector.load %arg4[%c0_24, %c2, %c0_25, %c0_26] : memref<1x5x8x128xf32, #tpu.memory_space<vmem>>, vector<1x1x8x128xf32>
    %31 = vector.shape_cast %30 : vector<1x1x8x128xf32> to vector<8x128xf32>
    %32 = arith.addf %31, %8 : vector<8x128xf32>
    %c0_27 = arith.constant 0 : index
    %c2_28 = arith.constant 2 : index
    %c0_29 = arith.constant 0 : index
    %c0_30 = arith.constant 0 : index
    %33 = vector.load %arg4[%c0_27, %c2_28, %c0_29, %c0_30] : memref<1x5x8x128xf32, #tpu.memory_space<vmem>>, vector<1x1x8x128xf32>
    %34 = vector.shape_cast %33 : vector<1x1x8x128xf32> to vector<8x128xf32>
    %35 = vector.shape_cast %32 : vector<8x128xf32> to vector<1x1x8x128xf32>
    tpu.vector_store %arg4[%c0_27, %c2_28, %c0_29, %c0_30], %35 {strides = array<i32>} : memref<1x5x8x128xf32, #tpu.memory_space<vmem>>, vector<1x1x8x128xf32>,
    %c0_31 = arith.constant 0 : index
    %c3 = arith.constant 3 : index
    %c0_32 = arith.constant 0 : index
    %c0_33 = arith.constant 0 : index
    %36 = vector.load %arg4[%c0_31, %c3, %c0_32, %c0_33] : memref<1x5x8x128xf32, #tpu.memory_space<vmem>>, vector<1x1x8x128xf32>
    %37 = vector.shape_cast %36 : vector<1x1x8x128xf32> to vector<8x128xf32>
    %38 = arith.mulf %6, %6 : vector<8x128xf32>
    %39 = arith.addf %37, %38 : vector<8x128xf32>
    %c0_34 = arith.constant 0 : index
    %c3_35 = arith.constant 3 : index
    %c0_36 = arith.constant 0 : index
    %c0_37 = arith.constant 0 : index
    %40 = vector.load %arg4[%c0_34, %c3_35, %c0_36, %c0_37] : memref<1x5x8x128xf32, #tpu.memory_space<vmem>>, vector<1x1x8x128xf32>
    %41 = vector.shape_cast %40 : vector<1x1x8x128xf32> to vector<8x128xf32>
    %42 = vector.shape_cast %39 : vector<8x128xf32> to vector<1x1x8x128xf32>
    tpu.vector_store %arg4[%c0_34, %c3_35, %c0_36, %c0_37], %42 {strides = array<i32>} : memref<1x5x8x128xf32, #tpu.memory_space<vmem>>, vector<1x1x8x128xf32>,
    %c0_38 = arith.constant 0 : index
    %c4 = arith.constant 4 : index
    %c0_39 = arith.constant 0 : index
    %c0_40 = arith.constant 0 : index
    %43 = vector.load %arg4[%c0_38, %c4, %c0_39, %c0_40] : memref<1x5x8x128xf32, #tpu.memory_space<vmem>>, vector<1x1x8x128xf32>
    %44 = vector.shape_cast %43 : vector<1x1x8x128xf32> to vector<8x128xf32>
    %45 = arith.mulf %8, %8 : vector<8x128xf32>
    %46 = arith.addf %44, %45 : vector<8x128xf32>
    %c0_41 = arith.constant 0 : index
    %c4_42 = arith.constant 4 : index
    %c0_43 = arith.constant 0 : index
    %c0_44 = arith.constant 0 : index
    %47 = vector.load %arg4[%c0_41, %c4_42, %c0_43, %c0_44] : memref<1x5x8x128xf32, #tpu.memory_space<vmem>>, vector<1x1x8x128xf32>
    %48 = vector.shape_cast %47 : vector<1x1x8x128xf32> to vector<8x128xf32>
    %49 = vector.shape_cast %46 : vector<8x128xf32> to vector<1x1x8x128xf32>
    tpu.vector_store %arg4[%c0_41, %c4_42, %c0_43, %c0_44], %49 {strides = array<i32>} : memref<1x5x8x128xf32, #tpu.memory_space<vmem>>, vector<1x1x8x128xf32>,
    %c1_i32 = arith.constant 1 : i32
    %c128_i32_45 = arith.constant 128 : i32
    %50 = arith.muli %c1_i32, %c128_i32_45 : i32
    %51 = tpu.assume_multiple %50, 128 : i32
    %c0_46 = arith.constant 0 : index
    %52 = arith.index_cast %51 : i32 to index
    %53 = vector.load %arg2[%c0_46, %52] : memref<8x256xf32, #tpu.memory_space<vmem>>, vector<8x128xf32>
    %c0_47 = arith.constant 0 : index
    %54 = arith.index_cast %51 : i32 to index
    %55 = vector.load %arg3[%c0_47, %54] : memref<8x256xf32, #tpu.memory_space<vmem>>, vector<8x128xf32>
    %56 = arith.subf %53, %55 : vector<8x128xf32>
    %c0_48 = arith.constant 0 : index
    %c0_49 = arith.constant 0 : index
    %c0_50 = arith.constant 0 : index
    %57 = vector.load %arg5[%c0_48, %c0_49, %c0_50] : memref<1x8x8xf32, #tpu.memory_space<vmem>>, vector<1x8x8xf32>
    %58 = vector.shape_cast %57 : vector<1x8x8xf32> to vector<8x8xf32>
    %cst_51 = arith.constant dense<0.000000e+00> : vector<8x8xf32>
    %59 = tpu.matmul %56, %56, %cst_51 {dimension_numbers = #tpu.dot_dimension_numbers<[1], [1], [0], [0], [0, 0, 1, 0], [], []>} : vector<8x128xf32>, vector<8x128xf32>, vector<8x8xf32> -> vector<8x8xf32>
    %60 = arith.addf %58, %59 : vector<8x8xf32>
    %c0_52 = arith.constant 0 : index
    %c0_53 = arith.constant 0 : index
    %c0_54 = arith.constant 0 : index
    %61 = vector.load %arg5[%c0_52, %c0_53, %c0_54] : memref<1x8x8xf32, #tpu.memory_space<vmem>>, vector<1x8x8xf32>
    %62 = vector.shape_cast %61 : vector<1x8x8xf32> to vector<8x8xf32>
    %63 = vector.shape_cast %60 : vector<8x8xf32> to vector<1x8x8xf32>
    tpu.vector_store %arg5[%c0_52, %c0_53, %c0_54], %63 {strides = array<i32>} : memref<1x8x8xf32, #tpu.memory_space<vmem>>, vector<1x8x8xf32>,
    %c0_55 = arith.constant 0 : index
    %c0_56 = arith.constant 0 : index
    %c0_57 = arith.constant 0 : index
    %c0_58 = arith.constant 0 : index
    %64 = vector.load %arg4[%c0_55, %c0_56, %c0_57, %c0_58] : memref<1x5x8x128xf32, #tpu.memory_space<vmem>>, vector<1x1x8x128xf32>
    %65 = vector.shape_cast %64 : vector<1x1x8x128xf32> to vector<8x128xf32>
    %66 = math.absf %56 : vector<8x128xf32>
    %67 = arith.addf %65, %66 : vector<8x128xf32>
    %c0_59 = arith.constant 0 : index
    %c0_60 = arith.constant 0 : index
    %c0_61 = arith.constant 0 : index
    %c0_62 = arith.constant 0 : index
    %68 = vector.load %arg4[%c0_59, %c0_60, %c0_61, %c0_62] : memref<1x5x8x128xf32, #tpu.memory_space<vmem>>, vector<1x1x8x128xf32>
    %69 = vector.shape_cast %68 : vector<1x1x8x128xf32> to vector<8x128xf32>
    %70 = vector.shape_cast %67 : vector<8x128xf32> to vector<1x1x8x128xf32>
    tpu.vector_store %arg4[%c0_59, %c0_60, %c0_61, %c0_62], %70 {strides = array<i32>} : memref<1x5x8x128xf32, #tpu.memory_space<vmem>>, vector<1x1x8x128xf32>,
    %c0_63 = arith.constant 0 : index
    %c1_64 = arith.constant 1 : index
    %c0_65 = arith.constant 0 : index
    %c0_66 = arith.constant 0 : index
    %71 = vector.load %arg4[%c0_63, %c1_64, %c0_65, %c0_66] : memref<1x5x8x128xf32, #tpu.memory_space<vmem>>, vector<1x1x8x128xf32>
    %72 = vector.shape_cast %71 : vector<1x1x8x128xf32> to vector<8x128xf32>
    %73 = arith.addf %72, %53 : vector<8x128xf32>
    %c0_67 = arith.constant 0 : index
    %c1_68 = arith.constant 1 : index
    %c0_69 = arith.constant 0 : index
    %c0_70 = arith.constant 0 : index
    %74 = vector.load %arg4[%c0_67, %c1_68, %c0_69, %c0_70] : memref<1x5x8x128xf32, #tpu.memory_space<vmem>>, vector<1x1x8x128xf32>
    %75 = vector.shape_cast %74 : vector<1x1x8x128xf32> to vector<8x128xf32>
    %76 = vector.shape_cast %73 : vector<8x128xf32> to vector<1x1x8x128xf32>
    tpu.vector_store %arg4[%c0_67, %c1_68, %c0_69, %c0_70], %76 {strides = array<i32>} : memref<1x5x8x128xf32, #tpu.memory_space<vmem>>, vector<1x1x8x128xf32>,
    %c0_71 = arith.constant 0 : index
    %c2_72 = arith.constant 2 : index
    %c0_73 = arith.constant 0 : index
    %c0_74 = arith.constant 0 : index
    %77 = vector.load %arg4[%c0_71, %c2_72, %c0_73, %c0_74] : memref<1x5x8x128xf32, #tpu.memory_space<vmem>>, vector<1x1x8x128xf32>
    %78 = vector.shape_cast %77 : vector<1x1x8x128xf32> to vector<8x128xf32>
    %79 = arith.addf %78, %55 : vector<8x128xf32>
    %c0_75 = arith.constant 0 : index
    %c2_76 = arith.constant 2 : index
    %c0_77 = arith.constant 0 : index
    %c0_78 = arith.constant 0 : index
    %80 = vector.load %arg4[%c0_75, %c2_76, %c0_77, %c0_78] : memref<1x5x8x128xf32, #tpu.memory_space<vmem>>, vector<1x1x8x128xf32>
    %81 = vector.shape_cast %80 : vector<1x1x8x128xf32> to vector<8x128xf32>
    %82 = vector.shape_cast %79 : vector<8x128xf32> to vector<1x1x8x128xf32>
    tpu.vector_store %arg4[%c0_75, %c2_76, %c0_77, %c0_78], %82 {strides = array<i32>} : memref<1x5x8x128xf32, #tpu.memory_space<vmem>>, vector<1x1x8x128xf32>,
    %c0_79 = arith.constant 0 : index
    %c3_80 = arith.constant 3 : index
    %c0_81 = arith.constant 0 : index
    %c0_82 = arith.constant 0 : index
    %83 = vector.load %arg4[%c0_79, %c3_80, %c0_81, %c0_82] : memref<1x5x8x128xf32, #tpu.memory_space<vmem>>, vector<1x1x8x128xf32>
    %84 = vector.shape_cast %83 : vector<1x1x8x128xf32> to vector<8x128xf32>
    %85 = arith.mulf %53, %53 : vector<8x128xf32>
    %86 = arith.addf %84, %85 : vector<8x128xf32>
    %c0_83 = arith.constant 0 : index
    %c3_84 = arith.constant 3 : index
    %c0_85 = arith.constant 0 : index
    %c0_86 = arith.constant 0 : index
    %87 = vector.load %arg4[%c0_83, %c3_84, %c0_85, %c0_86] : memref<1x5x8x128xf32, #tpu.memory_space<vmem>>, vector<1x1x8x128xf32>
    %88 = vector.shape_cast %87 : vector<1x1x8x128xf32> to vector<8x128xf32>
    %89 = vector.shape_cast %86 : vector<8x128xf32> to vector<1x1x8x128xf32>
    tpu.vector_store %arg4[%c0_83, %c3_84, %c0_85, %c0_86], %89 {strides = array<i32>} : memref<1x5x8x128xf32, #tpu.memory_space<vmem>>, vector<1x1x8x128xf32>,
    %c0_87 = arith.constant 0 : index
    %c4_88 = arith.constant 4 : index
    %c0_89 = arith.constant 0 : index
    %c0_90 = arith.constant 0 : index
    %90 = vector.load %arg4[%c0_87, %c4_88, %c0_89, %c0_90] : memref<1x5x8x128xf32, #tpu.memory_space<vmem>>, vector<1x1x8x128xf32>
    %91 = vector.shape_cast %90 : vector<1x1x8x128xf32> to vector<8x128xf32>
    %92 = arith.mulf %55, %55 : vector<8x128xf32>
    %93 = arith.addf %91, %92 : vector<8x128xf32>
    %c0_91 = arith.constant 0 : index
    %c4_92 = arith.constant 4 : index
    %c0_93 = arith.constant 0 : index
    %c0_94 = arith.constant 0 : index
    %94 = vector.load %arg4[%c0_91, %c4_92, %c0_93, %c0_94] : memref<1x5x8x128xf32, #tpu.memory_space<vmem>>, vector<1x1x8x128xf32>
    %95 = vector.shape_cast %94 : vector<1x1x8x128xf32> to vector<8x128xf32>
    %96 = vector.shape_cast %93 : vector<8x128xf32> to vector<1x1x8x128xf32>
    tpu.vector_store %arg4[%c0_91, %c4_92, %c0_93, %c0_94], %96 {strides = array<i32>} : memref<1x5x8x128xf32, #tpu.memory_space<vmem>>, vector<1x1x8x128xf32>,
    %c2_i32 = arith.constant 2 : i32
    return
  }
  func.func @transform_0(%arg0: i32, %arg1: i32) -> (i32, i32) {
    %c1_i32 = arith.constant 1 : i32
    %0 = arith.muli %arg0, %c1_i32 : i32
    %1 = arith.addi %0, %arg1 : i32
    %c0_i32 = arith.constant 0 : i32
    %c0_i32_0 = arith.constant 0 : i32
    return %c0_i32, %1 : i32, i32
  }
  func.func @transform_1(%arg0: i32, %arg1: i32) -> (i32, i32) {
    %c1_i32 = arith.constant 1 : i32
    %0 = arith.muli %arg0, %c1_i32 : i32
    %1 = arith.addi %0, %arg1 : i32
    %c0_i32 = arith.constant 0 : i32
    %c0_i32_0 = arith.constant 0 : i32
    return %c0_i32, %1 : i32, i32
  }
  func.func @transform_2(%arg0: i32, %arg1: i32) -> (i32, i32, i32, i32) {
    %c0_i32 = arith.constant 0 : i32
    %c0_i32_0 = arith.constant 0 : i32
    %c0_i32_1 = arith.constant 0 : i32
    %c0_i32_2 = arith.constant 0 : i32
    return %arg0, %c0_i32, %c0_i32_0, %c0_i32_1 : i32, i32, i32, i32
  }
  func.func @transform_3(%arg0: i32, %arg1: i32) -> (i32, i32, i32) {
    %c0_i32 = arith.constant 0 : i32
    %c0_i32_0 = arith.constant 0 : i32
    %c0_i32_1 = arith.constant 0 : i32
    return %arg0, %c0_i32, %c0_i32_0 : i32, i32, i32
  }
}

</mosaic_0001>

<bundles_post_ra>
// kernel: combined_steganography_loss.1
= control target key start
LH: loop header
LB: loop body
LE: loop exit
PB: predicated region body
PF: predicated region fallthrough
CT: control target
= control target key end

     0   :  { %vm66_vm0 = vcmask 64512   ;;  %v317_v0 = vmov 0.0   ;;  %vm318_vm1 = vmmov 0   ;;  %s384_s0 = inlined_call_operand.vmem [shape: f32[8,256], index: 0, kind: input, shape index: {}]   ;;  %s385_s1 = inlined_call_operand.vmem [shape: f32[8,256], index: 1, kind: input, shape index: {}]   ;;  %s386_s3 = inlined_call_operand.vmem [shape: f32[1,8,8], index: 3, kind: output, shape index: {1}]   ;;  %s387_s2 = inlined_call_operand.vmem [shape: f32[1,5,8,128], index: 2, kind: output, shape index: {0}]  }
   0x1   :  { %305 = vmatprep.subr.mxu0 %v317_v0  ;;  %v68_v1 = vld [vmem:[%s384_s0] sm:$0xff]  ;;  %307 = vmatprep.mubr.msk.f32.mxu0 %vm318_vm1, %v317_v0  ;;  %v291_v3 = vld [vmem:[%s384_s0 + $0x8] sm:$0xff]  ;;  %67 = vst.msk [vmem:[%s386_s3] sm:$0xff] %vm66_vm0, %v317_v0 }
   0x2   :  { %v69_v2 = vld [vmem:[%s385_s1] sm:$0xff]  ;;  %v159_v5 = vmul.f32 %v68_v1, %v68_v1  ;;  %310 = vmatprep.subr.mxu1 %v317_v0  ;;  %v292_v6 = vld [vmem:[%s385_s1 + $0x8] sm:$0xff]  ;;  %v256_v9 = vmul.f32 %v291_v3, %v291_v3  ;;  %312 = vmatprep.mubr.msk.f32.mxu1 %vm318_vm1, %v317_v0  ;;  %v250_v12 = vadd.f32 %v291_v3, %v68_v1 }
   0x3   :  { %v70_v4 = vsub.f32 %v68_v1, %v69_v2  ;;  %v164_v7 = vmul.f32 %v69_v2, %v69_v2  ;;  %v171_v8 = vsub.f32 %v291_v3, %v292_v6  ;;  %v260_v10 = vmul.f32 %v292_v6, %v292_v6 }
   0x4   :  { %v253_v13 = vadd.f32 %v292_v6, %v69_v2  ;;  %294 = vst [vmem:[%s387_s2 + $0x8] sm:$0xff] %v250_v12  ;;  %v257_v15 = vadd.f32 %v256_v9, %v159_v5 }
   0x5   :  { %306 = vmatpush3.xpose.msra.mxu0 %v70_v4  ;;  %v146_v11 = vand.u32 2147483647, %v70_v4  ;;  %311 = vmatpush3.xpose.msra.mxu1 %v171_v8  ;;  %v246_v14 = vand.u32 2147483647, %v171_v8  ;;  %v261_v16 = vadd.f32 %v260_v10, %v164_v7 }
   0x6   :  { %296 = vst [vmem:[%s387_s2 + $0x10] sm:$0xff] %v253_v13  ;;  %298 = vst [vmem:[%s387_s2 + $0x18] sm:$0xff] %v257_v15 }
   0x7   :  { %v247_v17 = vadd.f32 %v246_v14, %v146_v11  ;;  %300 = vst [vmem:[%s387_s2 + $0x20] sm:$0xff] %v261_v16 }
   0x8   :  { %308 = vmatmul.mubr.f32.vlgmr.msra.gmra.mxu0 %v70_v4  ;;  %313 = vmatmul.mubr.f32.vlgmr.msra.gmra.mxu1 %v171_v8  ;;  %v71_v18 = vld [vmem:[%s386_s3] sm:$0xff] }
   0x9   :  { %248 = vst [vmem:[%s387_s2] sm:$0xff] %v247_v17 }
  0xc8   :  { %v138_v19 = vpop.f32.mrf.mxu0  ;;  %v239_v21 = vpop.f32.mrf.mxu1 }
  0xc9   :  { %v142_v20 = vadd.f32 %v138_v19, %v71_v18 }
  0xca   :  { %v309_v22 = vpop.f32.mrf.mxu0  ;;  %v314_v23 = vpop.f32.mrf.mxu1 }
  0xcb   :  { %144 = vst.msk [vmem:[%s386_s3] sm:$0xff] %vm66_vm0, %v142_v20 }
  0xd2   :  { %v172_v24 = vld [vmem:[%s386_s3] sm:$0xff] }
  0xd3   :  { %v243_v25 = vadd.f32 %v239_v21, %v172_v24 }
  0xd5   :  { %244 = vst.msk [vmem:[%s386_s3] sm:$0xff] %vm66_vm0, %v243_v25 }

</bundles_post_ra>
